<compile_context>
chip_gen: v7x
topology: tpu7x:2x2x1
jax: 0.10.0
libtpu: 0.0.40
codegen_flags: <defaults>
</compile_context>

<pallas_src>
import numpy as np
import jax
import jax.numpy as jnp
from jax import lax
from jax.experimental import pallas as pl
from jax.experimental.pallas import tpu as pltpu


# ----------------------------------------------------------------------------
# Pallas kernels
# ----------------------------------------------------------------------------

def _linear_kernel(act):
    """y = act(x @ w + b).  Used both for single 2-D calls and for grid-batched
    heads (leading dim squeezed away by BlockSpec None)."""
    def kernel(x_ref, w_ref, b_ref, o_ref):
        y = jnp.dot(x_ref[...], w_ref[...],
                    preferred_element_type=jnp.float32) + b_ref[...]
        if act == "tanh":
            y = jnp.tanh(y)
        elif act == "relu":
            y = jnp.maximum(y, 0.0)
        elif act == "sigmoid":
            y = jax.nn.sigmoid(y)
        o_ref[...] = y
    return kernel


def linear(x, w, b, act="none"):
    N, K = x.shape
    M = w.shape[1]
    return pl.pallas_call(
        _linear_kernel(act),
        out_shape=jax.ShapeDtypeStruct((N, M), jnp.float32),
        grid=(1,),
        in_specs=[pl.BlockSpec((N, K), lambda i: (0, 0)),
                  pl.BlockSpec((K, M), lambda i: (0, 0)),
                  pl.BlockSpec((1, M), lambda i: (0, 0))],
        out_specs=pl.BlockSpec((N, M), lambda i: (0, 0)),
    )(x.astype(jnp.float32), w, b)


def linear3(x3, w3, b3, act="none"):
    """Three independent linear heads batched on one grid axis (parallel)."""
    _, N, K = x3.shape
    M = w3.shape[-1]
    return pl.pallas_call(
        _linear_kernel(act),
        out_shape=jax.ShapeDtypeStruct((3, N, M), jnp.float32),
        grid=(3,),
        in_specs=[pl.BlockSpec((None, N, K), lambda i: (i, 0, 0)),
                  pl.BlockSpec((None, K, M), lambda i: (i, 0, 0)),
                  pl.BlockSpec((None, 1, M), lambda i: (i, 0, 0))],
        out_specs=pl.BlockSpec((None, N, M), lambda i: (i, 0, 0)),
        compiler_params=pltpu.CompilerParams(dimension_semantics=("parallel",)),
    )(x3.astype(jnp.float32), w3, b3)


def _mlp_kernel(act):
    """Fused Linear -> ReLU -> Linear (-> optional sigmoid) in one kernel."""
    def kernel(x_ref, w1_ref, b1_ref, w2_ref, b2_ref, o_ref):
        h = jnp.dot(x_ref[...], w1_ref[...],
                    preferred_element_type=jnp.float32) + b1_ref[...]
        h = jnp.maximum(h, 0.0)
        y = jnp.dot(h, w2_ref[...],
                    preferred_element_type=jnp.float32) + b2_ref[...]
        if act == "sigmoid":
            y = jax.nn.sigmoid(y)
        o_ref[...] = y
    return kernel


def mlp3(x3, params3, act="none"):
    """Three MLP heads (one per modality) fused into one pallas_call, grid=(3,)."""
    w1, b1, w2, b2 = params3
    _, N, K = x3.shape
    M = w2.shape[-1]
    return pl.pallas_call(
        _mlp_kernel(act),
        out_shape=jax.ShapeDtypeStruct((3, N, M), jnp.float32),
        grid=(3,),
        in_specs=[pl.BlockSpec((None, N, K), lambda i: (i, 0, 0)),
                  pl.BlockSpec((None, K, K), lambda i: (i, 0, 0)),
                  pl.BlockSpec((None, 1, K), lambda i: (i, 0, 0)),
                  pl.BlockSpec((None, K, M), lambda i: (i, 0, 0)),
                  pl.BlockSpec((None, 1, M), lambda i: (i, 0, 0))],
        out_specs=pl.BlockSpec((None, N, M), lambda i: (i, 0, 0)),
        compiler_params=pltpu.CompilerParams(dimension_semantics=("parallel",)),
    )(x3.astype(jnp.float32), w1, b1, w2, b2)


def _supcon_kernel(temperature, base_temperature):
    def kernel(f_ref, mask_ref, o_ref):
        f = f_ref[...]
        norm = jnp.sqrt(jnp.sum(f * f, axis=-1, keepdims=True)) + 1e-12
        fn = f * pl.reciprocal(norm, approx=True)
        sim = lax.dot_general(fn, fn, (((1,), (1,)), ((), ())),
                              preferred_element_type=jnp.float32) / temperature
        M = f_ref.shape[0]
        row = lax.broadcasted_iota(jnp.int32, (M, M), 0)
        col = lax.broadcasted_iota(jnp.int32, (M, M), 1)
        logits_mask = jnp.where(row == col, 0.0, 1.0)
        logits = sim - jnp.max(sim, axis=-1, keepdims=True)
        exp_logits = jnp.exp(logits) * logits_mask
        log_prob = logits - jnp.log(jnp.sum(exp_logits, axis=-1, keepdims=True))
        pmask = mask_ref[...] * logits_mask
        mean_log_prob_pos = (jnp.sum(pmask * log_prob, axis=-1, keepdims=True) *
                             pl.reciprocal(jnp.sum(pmask, axis=-1, keepdims=True),
                                           approx=True))
        loss = -(temperature / base_temperature) * mean_log_prob_pos
        o_ref[...] = jnp.reshape(jnp.mean(loss), (1, 1))
    return kernel


def supcon_loss(features, mask, temperature, base_temperature=0.07):
    M, D = features.shape
    out = pl.pallas_call(
        _supcon_kernel(float(temperature), float(base_temperature)),
        out_shape=jax.ShapeDtypeStruct((1, 1), jnp.float32),
        grid=(1,),
        in_specs=[pl.BlockSpec((M, D), lambda i: (0, 0)),
                  pl.BlockSpec((M, M), lambda i: (0, 0))],
        out_specs=pl.BlockSpec((1, 1), lambda i: (0, 0)),
    )(features.astype(jnp.float32), mask.astype(jnp.float32))
    return out[0, 0]


def _softmax_ce_kernel(logits_ref, onehot_ref, w_ref, loss_ref):
    logits = logits_ref[...]
    m = jnp.max(logits, axis=-1, keepdims=True)
    z = logits - m
    e = jnp.exp(z)
    s = jnp.sum(e, axis=-1, keepdims=True)
    logp = z - jnp.log(s)
    nll = -jnp.sum(onehot_ref[...] * logp, axis=-1, keepdims=True)
    w = w_ref[...]
    loss_ref[...] = jnp.reshape(jnp.sum(w * nll) / jnp.sum(w), (1, 1))


def softmax_ce(logits, onehot, sample_w):
    """Weighted softmax cross-entropy (PyTorch CrossEntropyLoss(weight=..))."""
    N, E = logits.shape
    loss = pl.pallas_call(
        _softmax_ce_kernel,
        out_shape=jax.ShapeDtypeStruct((1, 1), jnp.float32),
        grid=(1,),
        in_specs=[pl.BlockSpec((N, E), lambda i: (0, 0)),
                  pl.BlockSpec((N, E), lambda i: (0, 0)),
                  pl.BlockSpec((N, 1), lambda i: (0, 0))],
        out_specs=pl.BlockSpec((1, 1), lambda i: (0, 0)),
    )(logits, onehot, sample_w)
    return loss[0, 0]


def _confident_loss_kernel(logits_ref, conf_ref, onehot_ref, w_ref, smat_ref,
                           loss_ref, nconf_ref):
    """Fused loss for the three predict heads + three confidence heads.
    Rows are the three modalities stacked: [text; audio; video]."""
    logits = logits_ref[...]                 # [3N, E]
    onehot = onehot_ref[...]                 # [3N, E]
    w = w_ref[...]                           # [3N, 1]
    m = jnp.max(logits, axis=-1, keepdims=True)
    z = logits - m
    e = jnp.exp(z)
    s = jnp.sum(e, axis=-1, keepdims=True)
    p = e * pl.reciprocal(s, approx=True)
    logp = z - jnp.log(s)
    nll = -jnp.sum(onehot * logp, axis=-1, keepdims=True)            # [3N,1]
    # sum of the 3 per-modality weighted CE losses (identical weights per
    # modality): sum_m [ sum_n w*nll / sum_n w ] == 3*sum(w3*nll)/sum(w3).
    ce_total = 3.0 * jnp.sum(w * nll) / jnp.sum(w)
    plab = jnp.sum(onehot * p, axis=-1, keepdims=True)               # [3N,1]
    conf = conf_ref[...]                                             # [3N,1]
    # sum of 3 MSELoss (mean over N each) == 3 * mean over 3N.
    mse_total = 3.0 * jnp.mean((conf - plab) ** 2)
    # cross-modality per-sample sum via a precomputed summing matrix (MXU).
    ssum = jnp.dot(smat_ref[...], conf,
                   preferred_element_type=jnp.float32) + 1e-13       # [3N,1]
    nconf_ref[...] = conf * pl.reciprocal(ssum, approx=True)
    loss_ref[...] = jnp.reshape(ce_total + mse_total, (1, 1))


def _alignment_kernel(margin, num_present):
    """Fully-vectorized prototype/margin loss + pairwise cosine similarities."""
    def kernel(pt_ref, pa_ref, pv_ref, onehot_ref, onehot_t_ref, pscale_ref,
               loss_ref, sim_ref):
        pt = pt_ref[...]
        pa = pa_ref[...]
        pv = pv_ref[...]
        onehot = onehot_ref[...]             # [N, E]
        onehot_t = onehot_t_ref[...]         # [E, N]
        # prototype per class = sum over that class of (t+a+v) / (3*count).
        proto = jnp.dot(onehot_t, pt + pa + pv,
                        preferred_element_type=jnp.float32) * pscale_ref[...]
        proto_per = jnp.dot(onehot, proto,
                            preferred_element_type=jnp.float32)      # [N, A]

        def hinge(x):
            per = jnp.mean((x - proto_per) ** 2, axis=1, keepdims=True)
            return jnp.maximum(per - margin, 0.0)

        def sub_sum(ly):
            numer = jnp.dot(onehot_t, ly, preferred_element_type=jnp.float32)
            denom = jnp.dot(onehot_t, (ly > 0).astype(jnp.float32),
                            preferred_element_type=jnp.float32) + 1e-13
            return jnp.sum(numer / denom)

        ly_t, ly_a, ly_v = hinge(pt), hinge(pa), hinge(pv)
        loss_sim = (sub_sum(ly_t) + sub_sum(ly_a) + sub_sum(ly_v)) / (
            3.0 * num_present)

        def cosv(a, b):
            na = jnp.maximum(jnp.sqrt(jnp.sum(a * a, axis=1, keepdims=True)), 1e-8)
            nb = jnp.maximum(jnp.sqrt(jnp.sum(b * b, axis=1, keepdims=True)), 1e-8)
            return jnp.sum(a * b, axis=1, keepdims=True) / (na * nb)

        sim_ref[...] = (cosv(pt, pa) + cosv(pt, pv) + cosv(pa, pv)) / 3.0
        loss_ref[...] = jnp.reshape(loss_sim, (1, 1))
    return kernel


def _bilstm_kernel(T, Dd, hid):
    """One LSTM direction over all T timesteps.  Weights stay resident in VMEM,
    h/c live in VMEM scratch; the time loop runs entirely inside the kernel."""
    def kernel(x_ref, wih_ref, whh_ref, b_ref, o_ref, h_sc, c_sc):
        h_sc[...] = jnp.zeros_like(h_sc)
        c_sc[...] = jnp.zeros_like(c_sc)
        wih = wih_ref[...]
        whh = whh_ref[...]
        b = jnp.broadcast_to(b_ref[...], (Dd, 4 * hid))   # hoisted, done once
        # T here is the max dialogue length (tiny) -> static unroll.
        # TODO(synk): for long sequences switch to lax.fori_loop over T.
        for t in range(T):
            x_t = x_ref[t]                                 # [Dd, K]
            gates = (jnp.dot(x_t, wih, preferred_element_type=jnp.float32)
                     + jnp.dot(h_sc[...], whh, preferred_element_type=jnp.float32)
                     + b)
            i = jax.nn.sigmoid(gates[:, 0 * hid:1 * hid])
            f = jax.nn.sigmoid(gates[:, 1 * hid:2 * hid])
            g = jnp.tanh(gates[:, 2 * hid:3 * hid])
            o = jax.nn.sigmoid(gates[:, 3 * hid:4 * hid])
            c_new = f * c_sc[...] + i * g
            h_new = o * jnp.tanh(c_new)
            c_sc[...] = c_new
            h_sc[...] = h_new
            o_ref[t] = h_new
    return kernel


def bilstm_layer(x_grid, lstm_params, rev_idx, hid):
    """One bidirectional LSTM layer in a single pallas_call with grid=(2,) over
    direction ("parallel" -> both directions can run on the two v7x cores)."""
    Dd, T, K = x_grid.shape
    wih, whh, b = lstm_params                    # [2,K,4h] [2,h,4h] [2,1,4h]
    x_rev = jnp.take_along_axis(x_grid, rev_idx[..., None], axis=1)
    x_stack = jnp.transpose(jnp.stack([x_grid, x_rev], 0), (0, 2, 1, 3))  # [2,T,Dd,K]
    out = pl.pallas_call(
        _bilstm_kernel(T, Dd, hid),
        out_shape=jax.ShapeDtypeStruct((2, T, Dd, hid), jnp.float32),
        grid=(2,),
        in_specs=[pl.BlockSpec((None, T, Dd, K), lambda d: (d, 0, 0, 0)),
                  pl.BlockSpec((None, K, 4 * hid), lambda d: (d, 0, 0)),
                  pl.BlockSpec((None, hid, 4 * hid), lambda d: (d, 0, 0)),
                  pl.BlockSpec((None, 1, 4 * hid), lambda d: (d, 0, 0))],
        out_specs=pl.BlockSpec((None, T, Dd, hid), lambda d: (d, 0, 0, 0)),
        scratch_shapes=[pltpu.VMEM((Dd, hid), jnp.float32),
                        pltpu.VMEM((Dd, hid), jnp.float32)],
        compiler_params=pltpu.CompilerParams(dimension_semantics=("parallel",)),
    )(x_stack, wih, whh, b)
    out = jnp.transpose(out, (0, 2, 1, 3))       # [2, Dd, T, hid]
    out_b = jnp.take_along_axis(out[1], rev_idx[..., None], axis=1)
    return jnp.concatenate([out[0], out_b], axis=-1)


# ----------------------------------------------------------------------------
# Static (host-side, trace-time) index helpers — no per-row Python ops at runtime
# ----------------------------------------------------------------------------

def flat_index_arrays(nums):
    d_idx = np.concatenate([np.full(n, i, np.int32) for i, n in enumerate(nums)])
    t_idx = np.concatenate([np.arange(n, dtype=np.int32) for n in nums])
    return d_idx, t_idx


def reverse_index(nums, T):
    rev = np.tile(np.arange(T, dtype=np.int32), (len(nums), 1))
    for d, L in enumerate(nums):
        rev[d, :L] = np.arange(L - 1, -1, -1, dtype=np.int32)
    return rev


# ----------------------------------------------------------------------------
# BertBaseline forward (mirrors the PyTorch module method by method)
# ----------------------------------------------------------------------------

def extract_text(params, cfg, input_ids, input_indices, indices_nums):
    # Stand-in encoder (see TODO(synk) at top): embeddings + Pallas linear+tanh.
    Dd, L = input_ids.shape
    emb = params["tok_emb"][input_ids] + params["pos_emb"][jnp.arange(L)][None]
    hid = linear(emb.reshape(Dd * L, -1), params["bert_w"], params["bert_b"],
                 act="tanh").reshape(Dd, L, -1)
    d_idx, j_idx = flat_index_arrays(indices_nums)
    starts = input_indices[d_idx, j_idx, 0]
    ends = input_indices[d_idx, j_idx, 1] - 1
    return (hid[d_idx, starts] + hid[d_idx, ends]) / 2.0


def decompose(params, cfg, text, audio, video):
    N = text.shape[0]
    x3 = jnp.stack([text, audio, video], axis=0)                  # [3, N, H]
    mod = mlp3(x3, params["modality3"])                            # [3, N, H]
    H = mod.shape[-1]
    # NB: reproduces the original quirk (text and audio share indicator 1).
    indicator = np.concatenate([np.ones(N), np.ones(N), np.full(N, 2.0)])
    modality_mask = (indicator[None, :] == indicator[:, None]).astype(np.float32)
    modality_loss = supcon_loss(mod.reshape(3 * N, H), jnp.asarray(modality_mask),
                                temperature=cfg["cl_temp"])

    utt = mlp3(mod, params["utterance3"])                          # [3, N, H]
    u = np.tile(np.arange(N), 3)
    utterance_mask = (u[None, :] == u[:, None]).astype(np.float32)
    utterance_loss = supcon_loss(utt.reshape(3 * N, H), jnp.asarray(utterance_mask),
                                 temperature=cfg["cl_temp"])
    rep = mod + utt
    return rep[0], rep[1], rep[2], modality_loss + utterance_loss


def confident(params, cfg, text, audio, video, labels_np):
    N = text.shape[0]
    E = cfg["num_emotions"]
    x3 = jnp.stack([text, audio, video], axis=0)                  # [3, N, 2H]
    logits3 = mlp3(x3, params["predict3"])                         # [3, N, E]
    conf3 = mlp3(x3, params["confident3"], act="sigmoid")          # [3, N, 1]

    onehot_np = np.eye(E, dtype=np.float32)[labels_np]
    cls_w = np.array([1.0] + [round(cfg["label_weight"], 1)] * (E - 1), np.float32)
    w_np = cls_w[labels_np][:, None]
    smat = np.kron(np.ones((3, 3), np.float32), np.eye(N, dtype=np.float32))
    M = 3 * N
    loss, nconf = pl.pallas_call(
        _confident_loss_kernel,
        out_shape=(jax.ShapeDtypeStruct((1, 1), jnp.float32),
                   jax.ShapeDtypeStruct((M, 1), jnp.float32)),
        grid=(1,),
        in_specs=[pl.BlockSpec((M, E), lambda i: (0, 0)),
                  pl.BlockSpec((M, 1), lambda i: (0, 0)),
                  pl.BlockSpec((M, E), lambda i: (0, 0)),
                  pl.BlockSpec((M, 1), lambda i: (0, 0)),
                  pl.BlockSpec((M, M), lambda i: (0, 0))],
        out_specs=(pl.BlockSpec((1, 1), lambda i: (0, 0)),
                   pl.BlockSpec((M, 1), lambda i: (0, 0))),
    )(logits3.reshape(M, E), conf3.reshape(M, 1),
      jnp.asarray(np.tile(onehot_np, (3, 1))),
      jnp.asarray(np.tile(w_np, (3, 1))),
      jnp.asarray(smat))
    return loss[0, 0], nconf[:N], nconf[N:2 * N], nconf[2 * N:]


def alignment(params, cfg, text, audio, video, labels_np):
    N = text.shape[0]
    E = cfg["num_emotions"]
    x3 = jnp.stack([text, audio, video], axis=0)
    proj3 = mlp3(x3, params["align3"])                             # [3, N, A]
    A = proj3.shape[-1]

    onehot_np = np.eye(E, dtype=np.float32)[labels_np]
    counts = onehot_np.sum(0)
    num_present = float((counts > 0).sum())
    pscale = np.where(counts > 0, 1.0 / (3.0 * np.maximum(counts, 1.0)),
                      0.0).astype(np.float32)[:, None]             # [E, 1]

    loss, sims = pl.pallas_call(
        _alignment_kernel(float(cfg["margin"]), num_present),
        out_shape=(jax.ShapeDtypeStruct((1, 1), jnp.float32),
                   jax.ShapeDtypeStruct((N, 1), jnp.float32)),
        grid=(1,),
        in_specs=[pl.BlockSpec((N, A), lambda i: (0, 0)),
                  pl.BlockSpec((N, A), lambda i: (0, 0)),
                  pl.BlockSpec((N, A), lambda i: (0, 0)),
                  pl.BlockSpec((N, E), lambda i: (0, 0)),
                  pl.BlockSpec((E, N), lambda i: (0, 0)),
                  pl.BlockSpec((E, 1), lambda i: (0, 0))],
        out_specs=(pl.BlockSpec((1, 1), lambda i: (0, 0)),
                   pl.BlockSpec((N, 1), lambda i: (0, 0))),
    )(proj3[0], proj3[1], proj3[2], jnp.asarray(onehot_np),
      jnp.asarray(np.ascontiguousarray(onehot_np.T)), jnp.asarray(pscale))
    return loss[0, 0], sims


def context_mixed(params, cfg, pooled_flat, pooled_grid, dialogue_num, similarity,
                  d_idx, t_idx, rev_idx):
    hid = cfg["text_hidden_size"] * 2
    l0 = bilstm_layer(pooled_grid, params["lstm0"], rev_idx, hid)
    nf = bilstm_layer(l0, params["lstm1"], rev_idx, hid)
    Dd, T, Hf = nf.shape
    lens = np.asarray(dialogue_num, np.int32)[:, None]
    t_range = np.arange(T, dtype=np.int32)[None, :]
    next_mask = jnp.asarray(((t_range + 1) < lens).astype(np.float32))[..., None]
    prev_mask = jnp.asarray((t_range >= 1).astype(np.float32))[..., None]
    zcol = jnp.zeros((Dd, 1, Hf), jnp.float32)
    nxt = jnp.concatenate([nf[:, 1:], zcol], axis=1) * next_mask
    prv = jnp.concatenate([zcol, nf[:, :-1]], axis=1) * prev_mask
    ctx_flat = (nxt + prv)[d_idx, t_idx]                           # [N, Hf]
    weight = 1.0 - similarity                                      # [N, 1]
    return jnp.concatenate(
        [pooled_flat, ctx_flat * weight * cfg["sim_weight"]], axis=-1)


def bert_baseline_forward(params, cfg, inputs):
    labels_np = inputs["input_labels"]
    dialogue_num = inputs["dialogue_num"]
    Hb = cfg["bert_hidden"]

    text_b = extract_text(params, cfg, inputs["input_ids"],
                          inputs["input_indices"], inputs["indices_nums"])
    # Zero-pad audio/video to the text width so the 3 unimodal projections run
    # as one grid=(3,) fused linear+tanh call.
    audio_p = jnp.pad(inputs["audio"], ((0, 0), (0, Hb - inputs["audio"].shape[1])))
    video_p = jnp.pad(inputs["video"], ((0, 0), (0, Hb - inputs["video"].shape[1])))
    uni = linear3(jnp.stack([text_b, audio_p, video_p], axis=0),
                  params["unimodal_w"], params["unimodal_b"], act="tanh")
    text, audio, video = uni[0], uni[1], uni[2]

    new_t, new_a, new_v, contrastive_loss = decompose(params, cfg, text, audio, video)
    text = jnp.concatenate([text, new_t * cfg["cl_weight"]], -1)
    audio = jnp.concatenate([audio, new_a * cfg["cl_weight"]], -1)
    video = jnp.concatenate([video, new_v * cfg["cl_weight"]], -1)
    loss_grl = contrastive_loss * cfg["cl_weight"]

    loss_conf, t_c, a_c, v_c = confident(params, cfg, text, audio, video, labels_np)
    pooled = jnp.concatenate(
        [(t_c * text + a_c * audio + v_c * video) * cfg["conf_weight"],
         text + audio + video], -1)

    loss_sim, similarity = alignment(params, cfg, text, audio, video, labels_np)

    Dd = len(dialogue_num)
    T = max(dialogue_num)
    d_idx, t_idx = flat_index_arrays(dialogue_num)
    rev_idx = jnp.asarray(reverse_index(dialogue_num, T))
    pooled_grid = jnp.zeros((Dd, T, pooled.shape[-1]),
                            jnp.float32).at[d_idx, t_idx].set(pooled)
    final = context_mixed(params, cfg, pooled, pooled_grid, dialogue_num,
                          similarity, d_idx, t_idx, rev_idx)
    logits = linear(final, *params["classifiers"], act="none")

    E = cfg["num_emotions"]
    onehot = jnp.asarray(np.eye(E, dtype=np.float32)[labels_np])
    cls_w = np.array([1.0] + [round(cfg["label_weight"], 1)] * (E - 1), np.float32)
    sample_w = jnp.asarray(cls_w[labels_np][:, None])
    ce = softmax_ce(logits, onehot, sample_w)

    loss = ce + loss_grl + loss_sim * cfg["sim_loss"] + loss_conf * cfg["conf_loss"]
    return logits, loss


# ----------------------------------------------------------------------------
# Deterministic parameter init (stacked per-modality / per-direction)
# ----------------------------------------------------------------------------

def dense_init(key, n_in, n_out):
    w = jax.random.normal(key, (n_in, n_out), jnp.float32) / np.sqrt(n_in)
    return w, jnp.zeros((1, n_out), jnp.float32)


def stacked_padded_dense(key, in_sizes, n_out, k_pad):
    ks = jax.random.split(key, len(in_sizes))
    ws, bs = [], []
    for k, n_in in zip(ks, in_sizes):
        w, b = dense_init(k, n_in, n_out)
        ws.append(jnp.pad(w, ((0, k_pad - n_in), (0, 0))))
        bs.append(b)
    return jnp.stack(ws), jnp.stack(bs)


def mlp3_init(key, n_in, n_out):
    ks = jax.random.split(key, 3)
    w1, b1, w2, b2 = [], [], [], []
    for k in ks:
        k1, k2 = jax.random.split(k)
        wa, ba = dense_init(k1, n_in, n_in)
        wb, bb = dense_init(k2, n_in, n_out)
        w1.append(wa); b1.append(ba); w2.append(wb); b2.append(bb)
    return (jnp.stack(w1), jnp.stack(b1), jnp.stack(w2), jnp.stack(b2))


def bilstm_init(key, n_in, hid):
    def one(k):
        k1, k2 = jax.random.split(k)
        wih = jax.random.normal(k1, (n_in, 4 * hid), jnp.float32) / np.sqrt(n_in)
        whh = jax.random.normal(k2, (hid, 4 * hid), jnp.float32) / np.sqrt(hid)
        return wih, whh, jnp.zeros((1, 4 * hid), jnp.float32)
    kf, kb = jax.random.split(key)
    f, b = one(kf), one(kb)
    return (jnp.stack([f[0], b[0]]), jnp.stack([f[1], b[1]]),
            jnp.stack([f[2], b[2]]))


def init_params(cfg, key):
    H = cfg["text_hidden_size"]
    Hb = cfg["bert_hidden"]
    E = cfg["num_emotions"]
    A = cfg["align_size"]
    hid = 2 * H
    ks = list(jax.random.split(key, 16))
    p = {}
    p["tok_emb"] = jax.random.normal(ks[0], (cfg["vocab_size"], Hb), jnp.float32) * 0.1
    p["pos_emb"] = jax.random.normal(ks[1], (cfg["max_len"], Hb), jnp.float32) * 0.1
    p["bert_w"], p["bert_b"] = dense_init(ks[2], Hb, Hb)
    p["unimodal_w"], p["unimodal_b"] = stacked_padded_dense(
        ks[3], [Hb, cfg["audio_in_size"], cfg["video_in_size"]], H, Hb)
    p["modality3"] = mlp3_init(ks[4], H, H)
    p["utterance3"] = mlp3_init(ks[5], H, H)
    p["align3"] = mlp3_init(ks[6], 2 * H, A)
    p["confident3"] = mlp3_init(ks[7], 2 * H, 1)
    p["predict3"] = mlp3_init(ks[8], 2 * H, E)
    p["classifiers"] = dense_init(ks[9], H * (2 + 3 * 2), E)
    p["lstm0"] = bilstm_init(ks[10], 4 * H, hid)
    p["lstm1"] = bilstm_init(ks[11], 2 * hid, hid)
    # NOTE: speaker_embedding and self.dropout are created in __init__ but never
    # used in forward(), so they are omitted.
    return p


# ----------------------------------------------------------------------------
# Main
# ----------------------------------------------------------------------------

if __name__ == "__main__":
    cfg = dict(text_hidden_size=16, audio_hidden_size=16, video_hidden_size=16,
               bert_hidden=32, audio_in_size=24, video_in_size=20,
               num_emotions=4, align_size=8,
               cl_temp=0.5, cl_weight=0.5, conf_weight=1.0, sim_weight=1.0,
               sim_loss=1.0, conf_loss=1.0, margin=0.2, label_weight=1.5,
               vocab_size=50, max_len=16)

    key = jax.random.PRNGKey(0)
    k_ids, k_audio, k_video, k_param = jax.random.split(key, 4)

    dialogue_num = [3, 2]          # utterances per dialogue
    indices_nums = [3, 2]
    N = sum(dialogue_num)          # total utterances = 5
    Dd, L = len(dialogue_num), cfg["max_len"]

    input_ids = jax.random.randint(k_ids, (Dd, L), 0, cfg["vocab_size"], jnp.int32)
    input_masks = jnp.ones((Dd, L), jnp.int32)       # unused by stand-in encoder
    input_segments = jnp.zeros((Dd, L), jnp.int32)   # unused by stand-in encoder
    input_indices = jnp.asarray(np.array(
        [[[1, 5], [5, 9], [9, 13]],
         [[1, 6], [6, 12], [0, 1]]], dtype=np.int32))
    audio = jax.random.normal(k_audio, (N, cfg["audio_in_size"]), jnp.float32)
    video = jax.random.normal(k_video, (N, cfg["video_in_size"]), jnp.float32)
    input_labels = np.array([0, 1, 2, 0, 3], dtype=np.int32)

    inputs = dict(input_ids=input_ids, input_masks=input_masks,
                  input_segments=input_segments, audio=audio, video=video,
                  dialogue_num=dialogue_num, input_labels=input_labels,
                  input_indices=input_indices, indices_nums=indices_nums)

    params = init_params(cfg, k_param)

    logits, loss = bert_baseline_forward(params, cfg, inputs)
    jax.block_until_ready((logits, loss))
    print("KERNEL_OK")
</pallas_src>

<mosaic_0001>
module attributes {stable_mosaic.version = 11 : i64} {
  func.func @kernel(%arg0: i32, %arg1: memref<32x32xf32, #tpu.memory_space<vmem>>, %arg2: memref<32x32xf32, #tpu.memory_space<vmem>>, %arg3: memref<1x32xf32, #tpu.memory_space<vmem>>, %arg4: memref<32x32xf32, #tpu.memory_space<vmem>>) attributes {dimension_semantics = [#tpu.dimension_semantics<arbitrary>], iteration_bounds = array<i64: 1>, scalar_prefetch = 0 : i64, scratch_operands = 0 : i64, tpu.core_type = #tpu.core_type<tc>, window_params = [{pipeline_mode = #tpu.pipeline_mode<synchronous>, transform_indices = @transform_0, window_bounds = array<i64: 32, 32>}, {pipeline_mode = #tpu.pipeline_mode<synchronous>, transform_indices = @transform_1, window_bounds = array<i64: 32, 32>}, {pipeline_mode = #tpu.pipeline_mode<synchronous>, transform_indices = @transform_2, window_bounds = array<i64: 1, 32>}, {pipeline_mode = #tpu.pipeline_mode<synchronous>, transform_indices = @transform_3, window_bounds = array<i64: 32, 32>}]} {
    %c0 = arith.constant 0 : index
    %c0_0 = arith.constant 0 : index
    %0 = vector.load %arg1[%c0, %c0_0] : memref<32x32xf32, #tpu.memory_space<vmem>>, vector<32x32xf32>
    %c0_1 = arith.constant 0 : index
    %c0_2 = arith.constant 0 : index
    %1 = vector.load %arg2[%c0_1, %c0_2] : memref<32x32xf32, #tpu.memory_space<vmem>>, vector<32x32xf32>
    %cst = arith.constant dense<0.000000e+00> : vector<32x32xf32>
    %2 = tpu.matmul %0, %1, %cst {dimension_numbers = #tpu.dot_dimension_numbers<[1], [0], [0], [1], [0, 0, 1, 1], [], []>} : vector<32x32xf32>, vector<32x32xf32>, vector<32x32xf32> -> vector<32x32xf32>
    %c0_3 = arith.constant 0 : index
    %c0_4 = arith.constant 0 : index
    %3 = vector.load %arg3[%c0_3, %c0_4] : memref<1x32xf32, #tpu.memory_space<vmem>>, vector<1x32xf32>
    %4 = vector.broadcast %3 : vector<1x32xf32> to vector<32x32xf32>
    %5 = arith.addf %2, %4 : vector<32x32xf32>
    %6 = math.tanh %5 : vector<32x32xf32>
    %c0_5 = arith.constant 0 : index
    %c0_6 = arith.constant 0 : index
    %7 = vector.load %arg4[%c0_5, %c0_6] : memref<32x32xf32, #tpu.memory_space<vmem>>, vector<32x32xf32>
    tpu.vector_store %arg4[%c0_5, %c0_6], %6 {strides = array<i32>} : memref<32x32xf32, #tpu.memory_space<vmem>>, vector<32x32xf32>,
    return
  }
  func.func @transform_0(%arg0: i32) -> (i32, i32) {
    %c0_i32 = arith.constant 0 : i32
    %c0_i32_0 = arith.constant 0 : i32
    %c0_i32_1 = arith.constant 0 : i32
    return %c0_i32, %c0_i32_0 : i32, i32
  }
  func.func @transform_1(%arg0: i32) -> (i32, i32) {
    %c0_i32 = arith.constant 0 : i32
    %c0_i32_0 = arith.constant 0 : i32
    %c0_i32_1 = arith.constant 0 : i32
    return %c0_i32, %c0_i32_0 : i32, i32
  }
  func.func @transform_2(%arg0: i32) -> (i32, i32) {
    %c0_i32 = arith.constant 0 : i32
    %c0_i32_0 = arith.constant 0 : i32
    %c0_i32_1 = arith.constant 0 : i32
    return %c0_i32, %c0_i32_0 : i32, i32
  }
  func.func @transform_3(%arg0: i32) -> (i32, i32) {
    %c0_i32 = arith.constant 0 : i32
    %c0_i32_0 = arith.constant 0 : i32
    %c0_i32_1 = arith.constant 0 : i32
    return %c0_i32, %c0_i32_0 : i32, i32
  }
}

</mosaic_0001>

<bundles_post_ra>
// kernel: tpu_custom_call.1
= control target key start
LH: loop header
LB: loop body
LE: loop exit
PB: predicated region body
PF: predicated region fallthrough
CT: control target
= control target key end

     0   :  { %8 = vsyncpa [#allocation3], 0  ;;  %s387_s0 = inlined_call_operand.hbm [shape: f32[32,32], index: 0, kind: input, shape index: {}]   ;;  %s388_s1 = inlined_call_operand.hbm [shape: f32[32,32], index: 1, kind: input, shape index: {}]   ;;  %s389_s2 = inlined_call_operand.vmem [shape: f32[1,32], index: 2, kind: input, shape index: {}]   ;;  %s390_s3 = inlined_call_operand.hbm [shape: f32[32,32], index: 3, kind: output, shape index: {}]  }
   0x1   :  { %9 = vsyncpa [#allocation6], 0 }
   0x2   :  { %10 = vsyncpa [#allocation4], 0  ;;  %s306_s12 = smov [#allocation2]   ;;  %s234_s16 = scalar_lea.hbm %s387_s0, 512 }
   0x3   :  { %s16_s13 = sshll.u32 %s306_s12, 4  ;;  %p235_p0 = scmp.ne.s32.totalorder %s387_s0, %s234_s16  ;;  %s17_s13 = int_to_ptr.vmem [resolvable:$true] %s16_s13 }
   0x4   :  { %p238_p1 = scmp.lt.u32.totalorder %s234_s16, %s387_s0 }
   0x6   :  { %p240_p2 = pnand %p238_p1, %p235_p0 }
   0x8   :  { %243 = shalt.err (!%p240_p2)
}
   0x9   :  { %s244_s21 = scalar_lea.vmem %s17_s13, 512  ;;  %p249_p4 = scmp.lt.s32.totalorder %s17_s13, %s17_s13 }
   0xa   :  { %p245_p3 = scmp.ne.s32.totalorder %s17_s13, %s244_s21  ;;  %p250_p5 = scmp.lt.s32.totalorder %s244_s21, %s244_s21 }
   0xc   :  { %p251_p6 = por %p250_p5, %p249_p4 }
   0xe   :  { %p252_p7 = pnand %p251_p6, %p245_p3 }
  0x10   :  { %255 = shalt.err (!%p252_p7)
}
  0x11   :  { %s307_s22 = smov 128   ;;  %s308_s23 = smov 8  }
  0x12   :  { %22 = dma.hbm_to_vmem [thread:$0]  %s387_s0, 512, %s17_s13, [#allocation3], %s307_s22, %s307_s22, %s308_s23  }
  0x13   :  { %s309_s26 = smov [#allocation5]   ;;  %s256_s30 = scalar_lea.hbm %s388_s1, 512 }
  0x14   :  { %s28_s27 = sshll.u32 %s309_s26, 4  ;;  %p257_p8 = scmp.ne.s32.totalorder %s388_s1, %s256_s30  ;;  %s29_s27 = int_to_ptr.vmem [resolvable:$true] %s28_s27 }
  0x15   :  { %p260_p9 = scmp.lt.u32.totalorder %s256_s30, %s388_s1 }
  0x17   :  { %p262_p10 = pnand %p260_p9, %p257_p8 }
  0x19   :  { %265 = shalt.err (!%p262_p10)
}
  0x1a   :  { %s266_s8 = scalar_lea.vmem %s29_s27, 512  ;;  %p271_p12 = scmp.lt.s32.totalorder %s29_s27, %s29_s27 }
  0x1b   :  { %p267_p11 = scmp.ne.s32.totalorder %s29_s27, %s266_s8  ;;  %p272_p13 = scmp.lt.s32.totalorder %s266_s8, %s266_s8 }
  0x1d   :  { %p273_p0 = por %p272_p13, %p271_p12 }
  0x1f   :  { %p274_p1 = pnand %p273_p0, %p267_p11 }
  0x21   :  { %277 = shalt.err (!%p274_p1)
}
  0x22   :  { %34 = dma.hbm_to_vmem [thread:$0]  %s388_s1, 512, %s29_s27, [#allocation6], %s307_s22, %s307_s22, %s308_s23  }
  0x23   :  { %300 = dma.done.wait [#allocation3], 512  }
  0x24   :  { %301 = vsyncadd [#allocation3], 4294966784 }
  0x25   :  { %302 = dma.done.wait [#allocation6], 512  }
  0x26   :  { %303 = vsyncadd [#allocation6], 4294966784  ;;  %vm58_vm0 = vcmask 261120   ;;  %v47_v0 = vld [vmem:[#allocation5] sm:$0xff]  ;;  %v48_v1 = vld [vmem:[#allocation5 + $0x8] sm:$0xff]  ;;  %s310_s11 = smov [#allocation7]  }
  0x27   :  { %v49_v2 = vld [vmem:[#allocation5 + $0x10] sm:$0xff]  ;;  %v209_v3 = vpack.c.bf16 %v48_v1, %v47_v0  ;;  %v50_v4 = vld [vmem:[#allocation5 + $0x18] sm:$0xff]  ;;  %v43_v5 = vld [vmem:[#allocation2] sm:$0xff]  ;;  %s169_s12 = sshll.u32 %s310_s11, 4  ;;  %s170_s12 = int_to_ptr.vmem [resolvable:$true] %s169_s12 }
  0x28   :  { %v45_v6 = vld [vmem:[#allocation2 + $0x10] sm:$0xff]  ;;  %v213_v7 = vpack.c.bf16 %v50_v4, %v49_v2  ;;  %203 = vmatprep.mubr.msk.f32.mxu0 %vm58_vm0, %v43_v5  ;;  %v44_v8 = vld [vmem:[#allocation2 + $0x8] sm:$0xff]  ;;  %v46_v9 = vld [vmem:[#allocation2 + $0x18] sm:$0xff]  ;;  %p283_p3 = scmp.lt.s32.totalorder %s170_s12, %s170_s12 }
  0x29   :  { %206 = vmatprep.mubr.msk.f32.mxu1 %vm58_vm0, %v45_v6  ;;  %210 = vmatprep.subr.bf16.mxu0 %v209_v3  ;;  %v182_v10 = vld [vmem:[%s389_s2] ss:$0 sm:$0xff]  ;;  %s278_s2 = scalar_lea.vmem %s170_s12, 512 }
  0x2a   :  { %217 = vmatprep.subr.bf16.mxu1 %v209_v3  ;;  %212 = vmatpush3.bf16.msra.mxu0 %v209_v3  ;;  %p279_p2 = scmp.ne.s32.totalorder %s170_s12, %s278_s2  ;;  %p284_p4 = scmp.lt.s32.totalorder %s278_s2, %s278_s2 }
  0x2b   :  { %219 = vmatpush3.bf16.msra.mxu1 %v209_v3  ;;  %214 = vmatprep.subr.bf16.mxu0 %v213_v7 }
  0x2c   :  { %218 = vmatprep.subr.bf16.mxu1 %v213_v7  ;;  %p285_p5 = por %p284_p4, %p283_p3 }
  0x2e   :  { %216 = vmatpush3.bf16.msra.mxu0 %v213_v7  ;;  %p286_p6 = pnand %p285_p5, %p279_p2 }
  0x2f   :  { %220 = vmatpush3.bf16.msra.mxu1 %v213_v7 }
  0x31   :  { %204 = vmatmul.mubr.msk.f32.vlgmr.msra.gmra.mrb[0].mxu0 %vm58_vm0, %v44_v8 }
  0x32   :  { %207 = vmatmul.mubr.msk.f32.vlgmr.msra.gmra.mrb[0].mxu1 %vm58_vm0, %v46_v9 }
 0x104   :  { %v205_v11 = vpop.f32.mrb[0].mxu0 }
 0x105   :  { %v208_v12 = vpop.f32.mrb[0].mxu1  ;;  %v143_v13 = vadd.f32 %v205_v11, %v182_v10  ;;  %v137_v15 = vpop.f32.mrb[1].mxu0 }
 0x106   :  { %v153_v14 = vadd.f32 %v208_v12, %v182_v10  ;;  %v147_v16 = vpop.f32.mrb[1].mxu1  ;;  %v138_v17 = vadd.f32 %v182_v10, %v137_v15 }
 0x107   :  { %v148_v18 = vadd.f32 %v182_v10, %v147_v16  ;;  %226 = vtanh.f32 %v143_v13 }
 0x108   :  { %228 = vtanh.f32 %v153_v14 }
 0x109   :  { %230 = vtanh.f32 %v138_v17 }
 0x10a   :  { %232 = vtanh.f32 %v148_v18 }
 0x111   :  { %v227_v19 = vpop.eup %226 }
 0x112   :  { %v229_v20 = vpop.eup %228  ;;  %161 = vst.msk [vmem:[#allocation7 + $0x8] sm:$0xff] %vm58_vm0, %v227_v19 }
 0x113   :  { %v231_v21 = vpop.eup %230  ;;  %163 = vst.msk [vmem:[#allocation7 + $0x18] sm:$0xff] %vm58_vm0, %v229_v20 }
 0x114   :  { %v233_v22 = vpop.eup %232  ;;  %160 = vst.msk [vmem:[#allocation7] sm:$0xff] %vm58_vm0, %v231_v21 }
 0x115   :  { %162 = vst.msk [vmem:[#allocation7 + $0x10] sm:$0xff] %vm58_vm0, %v233_v22 }
 0x116   :  { %289 = shalt.err (!%p286_p6)
}
 0x117   :  { %s290_s15 = scalar_lea.hbm %s390_s3, 512 }
 0x118   :  { %p291_p7 = scmp.ne.s32.totalorder %s390_s3, %s290_s15  ;;  %p294_p8 = scmp.lt.u32.totalorder %s290_s15, %s390_s3 }
 0x11a   :  { %p296_p9 = pnand %p294_p8, %p291_p7 }
 0x11c   :  { %299 = shalt.err (!%p296_p9)
}
 0x11d   :  { %175 = dma.vmem_to_hbm [thread:$0]  %s170_s12, 512, %s390_s3, [#allocation4], %s307_s22, %s307_s22, %s308_s23  }
 0x11e   :  { %304 = dma.done.wait [#allocation4], 512  }
 0x11f   :  { %305 = vsyncadd [#allocation4], 4294966784 }
 0x120   :  { %179 = vsyncpa [#allocation3], 1 }
 0x121   :  { %180 = vsyncpa [#allocation6], 1 }
 0x122   :  { %181 = vsyncpa [#allocation4], 1 }

</bundles_post_ra>
